<compile_context>
chip_gen: v7x
topology: tpu7x:2x2x1
jax: 0.10.0
libtpu: 0.0.40
codegen_flags: <defaults>
</compile_context>

<pallas_src>
import jax
import jax.numpy as jnp
from jax import lax
from jax.experimental import pallas as pl
from jax.experimental.pallas import tpu as pltpu


# --------------------------------------------------------------------------
# Kernel 1: per-node linear with lane-dense output
#   y_t[b, o, n] = sum_i x[b, n, i] * w_lin[i, o]       (bias folded later)
# --------------------------------------------------------------------------
def node_linear_kernel(x_ref, wlt_ref, yt_ref):
    # x_ref: (tb, Nnodes, in_dim); wlt_ref: (out_dim, in_dim)
    # yt_ref: (tb, out_dim, Nnodes)  -> Nnodes (large) is the lane dim.
    tb = x_ref.shape[0]
    wlt = wlt_ref[...]
    wlt_b = jnp.broadcast_to(wlt, (tb,) + wlt.shape)      # (tb, out_dim, in_dim)
    # Batched matmul contracting the shared last dim (in_dim); output
    # (batch, lhs_free=out_dim, rhs_free=Nnodes) -- same pattern as 'bqd,bkd->bqk'.
    yt = lax.dot_general(
        wlt_b, x_ref[...],
        dimension_numbers=(((2,), (2,)), ((0,), (0,))),
        preferred_element_type=jnp.float32)
    yt_ref[...] = yt.astype(yt_ref.dtype)


# --------------------------------------------------------------------------
# Kernel 2: fused Linear -> BatchNorm1d(eval, folded) -> Dropout(id) -> ReLU -> Linear
# --------------------------------------------------------------------------
def mlp_bn_kernel(y_ref, w1_ref, scale_ref, shift_ref, w2_ref, b2_ref, o_ref):
    # y_ref: (tile_b, F) low precision; w1_ref: (F, H); w2_ref: (H, F)
    # scale/shift: (1, H) f32 (BatchNorm + both upstream biases folded); b2: (1, F) f32
    h = jnp.dot(y_ref[...], w1_ref[...], preferred_element_type=jnp.float32)
    h = h * scale_ref[...] + shift_ref[...]
    # TODO(synk): Dropout(p=0.5) is identity at inference; training mode would
    # need pltpu.prng_seed + pltpu.stateful_bernoulli here.
    h = jnp.maximum(h, 0.0)
    out = jnp.dot(h.astype(w2_ref.dtype), w2_ref[...],
                  preferred_element_type=jnp.float32)
    o_ref[...] = (out + b2_ref[...]).astype(o_ref.dtype)


# --------------------------------------------------------------------------
# Wrapper
# --------------------------------------------------------------------------
def megnn_forward(x, w_lin, b_lin, w1, b1, bn_gamma, bn_beta, bn_mean, bn_var,
                  w2, b2, *, bn_eps=1e-5, weights_dtype=jnp.bfloat16,
                  node_tile_b=8, mlp_tile_b=128):
    """MEGNN forward (inference).

    x:      [B, Nnodes, in_dim]
    w_lin:  [in_dim, out_dim]           (torch Linear weight, transposed)
    w1:     [Nnodes*out_dim, hidden]    w2: [hidden, Nnodes*out_dim]
    bn_*:   BatchNorm1d(hidden) affine params + running statistics.
    Returns [B, Nnodes, out_dim].
    """
    B, Nnodes, in_dim = x.shape
    out_dim = w_lin.shape[1]
    F = Nnodes * out_dim
    H = w1.shape[1]
    out_dtype = x.dtype
    f32 = jnp.float32
    w_isize = jnp.dtype(weights_dtype).itemsize
    x_isize = jnp.dtype(x.dtype).itemsize
    o_isize = jnp.dtype(out_dtype).itemsize

    # ---- batch tiling shared by both stages (pad at most once, up front) ---
    if B <= mlp_tile_b:
        B_p = max(8, ((B + 7) // 8) * 8)
        tile_b2 = B_p                      # single step: one weight fetch/chip
    else:
        B_p = ((B + mlp_tile_b - 1) // mlp_tile_b) * mlp_tile_b
        tile_b2 = mlp_tile_b
    tile_b1 = min(node_tile_b, B_p)
    if B_p % tile_b1:
        tile_b1 = B_p

    x_p = x if B_p == B else jnp.pad(x, ((0, B_p - B), (0, 0), (0, 0)))

    # ---------------- stage 1: per-node linear, lane-dense y_t --------------
    wlt = jnp.transpose(w_lin)             # (out_dim, in_dim); tiny, stays f32
    vmem1 = int(min(max(2 * (tile_b1 * Nnodes * in_dim * x_isize
                             + tile_b1 * out_dim * Nnodes * w_isize)
                        + (4 << 20), 32 << 20), 64 << 20))
    cost1 = pl.CostEstimate(
        flops=2 * B_p * Nnodes * in_dim * out_dim,
        transcendentals=0,
        bytes_accessed=(B_p * Nnodes * in_dim * x_isize
                        + out_dim * in_dim * x_isize
                        + B_p * out_dim * Nnodes * w_isize))
    y_t = pl.pallas_call(
        node_linear_kernel,
        out_shape=jax.ShapeDtypeStruct((B_p, out_dim, Nnodes), weights_dtype),
        grid=(B_p // tile_b1,),
        in_specs=[
            pl.BlockSpec((tile_b1, Nnodes, in_dim), lambda i: (i, 0, 0)),
            pl.BlockSpec((out_dim, in_dim), lambda i: (0, 0)),   # tiny, resident
        ],
        out_specs=pl.BlockSpec((tile_b1, out_dim, Nnodes), lambda i: (i, 0, 0)),
        compiler_params=pltpu.CompilerParams(
            dimension_semantics=("parallel",), vmem_limit_bytes=vmem1),
        cost_estimate=cost1,
    )(x_p, wlt)

    # Free HBM metadata reshape: column order of y_perm is q' = o*Nnodes + n.
    y_perm = y_t.reshape(B_p, F)

    # ---------------- wrapper-side folds (all in f32) -----------------------
    w1_f = w1.astype(f32)
    # Permute W1 rows from (n*out_dim + o) to (o*Nnodes + n) to match y_perm.
    w1p = jnp.transpose(w1_f.reshape(Nnodes, out_dim, H), (1, 0, 2)).reshape(F, H)
    scale = bn_gamma.astype(f32) / jnp.sqrt(bn_var.astype(f32) + bn_eps)
    # Fold the per-node linear bias through W1, plus b1, plus BatchNorm shift.
    b1_eff = b1.astype(f32) + jnp.tile(b_lin.astype(f32), Nnodes) @ w1_f
    shift = (b1_eff - bn_mean.astype(f32)) * scale + bn_beta.astype(f32)

    # ---------------- stage 2: fused MLP + BN + ReLU (weights in bf16) ------
    vmem2 = int(min(max(2 * (2 * F * H * w_isize
                             + tile_b2 * F * (w_isize + o_isize)
                             + (F + 2 * H) * 4)
                        + (4 << 20), 32 << 20), 64 << 20))
    cost2 = pl.CostEstimate(
        flops=4 * B_p * F * H,
        transcendentals=0,
        bytes_accessed=(B_p * F * w_isize + 2 * F * H * w_isize
                        + B_p * F * o_isize + F * 4 + 2 * H * 4))
    out2d = pl.pallas_call(
        mlp_bn_kernel,
        out_shape=jax.ShapeDtypeStruct((B_p, F), out_dtype),
        grid=(B_p // tile_b2,),
        in_specs=[
            pl.BlockSpec((tile_b2, F), lambda i: (i, 0)),   # activations (lane-dense)
            pl.BlockSpec((F, H), lambda i: (0, 0)),         # W1 (permuted, resident)
            pl.BlockSpec((1, H), lambda i: (0, 0)),         # BN scale
            pl.BlockSpec((1, H), lambda i: (0, 0)),         # BN shift (+folded biases)
            pl.BlockSpec((H, F), lambda i: (0, 0)),         # W2 (resident)
            pl.BlockSpec((1, F), lambda i: (0, 0)),         # b2
        ],
        out_specs=pl.BlockSpec((tile_b2, F), lambda i: (i, 0)),
        compiler_params=pltpu.CompilerParams(
            # Weight-fetch bound at small B: avoid splitting a tiny batch
            # across TCs, which would duplicate the W1/W2 DMA.
            dimension_semantics=("arbitrary",),
            vmem_limit_bytes=vmem2),
        cost_estimate=cost2,
    )(y_perm, w1p.astype(weights_dtype),
      scale.reshape(1, H), shift.reshape(1, H),
      w2.astype(weights_dtype), b2.astype(f32).reshape(1, F))

    out = out2d if B_p == B else out2d[:B]
    return out.reshape(B, Nnodes, out_dim)


# --------------------------------------------------------------------------
# Pure-JAX reference (inference semantics of the torch module, f32)
# --------------------------------------------------------------------------
def reference_megnn(x, w_lin, b_lin, w1, b1, bn_gamma, bn_beta, bn_mean, bn_var,
                    w2, b2, *, bn_eps=1e-5):
    B, Nnodes, _ = x.shape
    y = jnp.einsum("bni,io->bno", x, w_lin) + b_lin
    y = y.reshape(B, -1)
    h = y @ w1 + b1
    h = (h - bn_mean) / jnp.sqrt(bn_var + bn_eps) * bn_gamma + bn_beta
    h = jnp.maximum(h, 0.0)                      # dropout = identity (eval)
    out = h @ w2 + b2
    return out.reshape(B, Nnodes, -1)


if __name__ == "__main__":
    # Small shapes consistent with the module (Nnodes shrunk from 3676):
    B, Nnodes, in_dim, out_dim, hidden_dim = 16, 64, 32, 8, 128
    F = Nnodes * out_dim

    key = jax.random.PRNGKey(0)
    ks = jax.random.split(key, 10)

    x = jax.random.normal(ks[0], (B, Nnodes, in_dim), dtype=jnp.float32)
    w_lin = 0.1 * jax.random.normal(ks[1], (in_dim, out_dim), jnp.float32)
    b_lin = 0.1 * jax.random.normal(ks[2], (out_dim,), jnp.float32)
    w1 = 0.05 * jax.random.normal(ks[3], (F, hidden_dim), jnp.float32)
    b1 = 0.1 * jax.random.normal(ks[4], (hidden_dim,), jnp.float32)
    w2 = 0.1 * jax.random.normal(ks[5], (hidden_dim, F), jnp.float32)
    b2 = 0.1 * jax.random.normal(ks[6], (F,), jnp.float32)
    bn_gamma = 1.0 + 0.1 * jax.random.normal(ks[7], (hidden_dim,), jnp.float32)
    bn_beta = 0.1 * jax.random.normal(ks[8], (hidden_dim,), jnp.float32)
    bn_mean = 0.1 * jax.random.normal(ks[9], (hidden_dim,), jnp.float32)
    bn_var = jnp.linspace(0.5, 1.5, hidden_dim, dtype=jnp.float32)

    out = megnn_forward(x, w_lin, b_lin, w1, b1, bn_gamma, bn_beta, bn_mean,
                        bn_var, w2, b2)
    out = jax.block_until_ready(out)
    assert out.shape == (B, Nnodes, out_dim)

    ref = reference_megnn(x, w_lin, b_lin, w1, b1, bn_gamma, bn_beta, bn_mean,
                          bn_var, w2, b2)
    max_err = float(jnp.max(jnp.abs(out - ref)))
    # bf16 weights / activations in the fused MLP -> loose tolerance vs f32 ref.
    assert jnp.allclose(out, ref, atol=5e-2, rtol=5e-2), \
        f"mismatch vs reference (max abs err {max_err})"

    print("KERNEL_OK")
</pallas_src>

<mosaic_0001>
module attributes {stable_mosaic.version = 11 : i64} {
  func.func @node_linear_kernel(%arg0: i32, %arg1: memref<8x64x32xf32, #tpu.memory_space<vmem>>, %arg2: memref<8x32xf32, #tpu.memory_space<vmem>>, %arg3: memref<8x8x64xbf16, #tpu.memory_space<vmem>>) attributes {dimension_semantics = [#tpu.dimension_semantics<parallel>], iteration_bounds = array<i64: 2>, scalar_prefetch = 0 : i64, scratch_operands = 0 : i64, tpu.core_type = #tpu.core_type<tc>, window_params = [{transform_indices = @transform_0, window_bounds = array<i64: 8, 64, 32>}, {pipeline_mode = #tpu.pipeline_mode<synchronous>, transform_indices = @transform_1, window_bounds = array<i64: 8, 32>}, {transform_indices = @transform_2, window_bounds = array<i64: 8, 8, 64>}]} {
    %c0 = arith.constant 0 : index
    %c0_0 = arith.constant 0 : index
    %0 = vector.load %arg2[%c0, %c0_0] : memref<8x32xf32, #tpu.memory_space<vmem>>, vector<8x32xf32>
    %1 = vector.shape_cast %0 : vector<8x32xf32> to vector<1x8x32xf32>
    %2 = vector.broadcast %1 : vector<1x8x32xf32> to vector<8x8x32xf32>
    %c0_1 = arith.constant 0 : index
    %c0_2 = arith.constant 0 : index
    %c0_3 = arith.constant 0 : index
    %3 = vector.load %arg1[%c0_1, %c0_2, %c0_3] : memref<8x64x32xf32, #tpu.memory_space<vmem>>, vector<8x64x32xf32>
    %cst = arith.constant dense<0.000000e+00> : vector<8x8x64xf32>
    %4 = tpu.matmul %2, %3, %cst {dimension_numbers = #tpu.dot_dimension_numbers<[2], [2], [1], [1], [0, 0, 0, 1, 1, 1], [0], [0]>} : vector<8x8x32xf32>, vector<8x64x32xf32>, vector<8x8x64xf32> -> vector<8x8x64xf32>
    %5 = arith.truncf %4 : vector<8x8x64xf32> to vector<8x8x64xbf16>
    %c0_4 = arith.constant 0 : index
    %c0_5 = arith.constant 0 : index
    %c0_6 = arith.constant 0 : index
    %6 = vector.load %arg3[%c0_4, %c0_5, %c0_6] : memref<8x8x64xbf16, #tpu.memory_space<vmem>>, vector<8x8x64xbf16>
    tpu.vector_store %arg3[%c0_4, %c0_5, %c0_6], %5 {strides = array<i32>} : memref<8x8x64xbf16, #tpu.memory_space<vmem>>, vector<8x8x64xbf16>,
    return
  }
  func.func @transform_0(%arg0: i32) -> (i32, i32, i32) {
    %c0_i32 = arith.constant 0 : i32
    %c0_i32_0 = arith.constant 0 : i32
    %c0_i32_1 = arith.constant 0 : i32
    return %arg0, %c0_i32, %c0_i32_0 : i32, i32, i32
  }
  func.func @transform_1(%arg0: i32) -> (i32, i32) {
    %c0_i32 = arith.constant 0 : i32
    %c0_i32_0 = arith.constant 0 : i32
    %c0_i32_1 = arith.constant 0 : i32
    return %c0_i32, %c0_i32_0 : i32, i32
  }
  func.func @transform_2(%arg0: i32) -> (i32, i32, i32) {
    %c0_i32 = arith.constant 0 : i32
    %c0_i32_0 = arith.constant 0 : i32
    %c0_i32_1 = arith.constant 0 : i32
    return %arg0, %c0_i32, %c0_i32_0 : i32, i32, i32
  }
}

</mosaic_0001>

<bundles_post_ra>
// kernel: tpu_custom_call.1
= control target key start
LH: loop header
LB: loop body
LE: loop exit
PB: predicated region body
PF: predicated region fallthrough
CT: control target
= control target key end

     0   :  { %7 = vsyncpa [#allocation3], 0  ;;  %s1949_s0 = inlined_call_operand.vmem [shape: f32[16,64,32], index: 0, kind: input, shape index: {}]   ;;  %s1950_s1 = inlined_call_operand.vmem [shape: f32[8,32], index: 1, kind: input, shape index: {}]   ;;  %s1951_s2 = inlined_call_operand.hbm [shape: bf16[16,8,64], index: 2, kind: output, shape index: {}]  }
   0x1   :  { %9 = vsyncpa [#allocation3 + $0x1], 0  ;;  %s1630_s9 = smov 0   ;;  %s1632_s10 = smov 0  }
   0x2   :  { %s1634_s11 = smov 0   ;;  %s1636_s12 = smov 0  }
   0x3 LB: > { %s1651_s13 = sadd.s32 4294967295, %s1607_s12   ;;  %s1062_s14 = sadd.s32 4294967294, %s1607_s12   ;;  %s1607_s12 = sphi %s1636_s12, %s1959_s12   ;;  %s1603_s11 = sphi %s1634_s11, %s1958_s11   ;;  %s1599_s10 = sphi %s1632_s10, %s1957_s10   ;;  %s1595_s9 = sphi %s1630_s9, %s1956_s9  }
   0x4   : > { %s1655_s15 = sadd.s32 1, %s1607_s12   ;;  %s69_s16 = sadd.s32 1, %s1603_s11 }
   0x5   : > { %s66_s17 = ssub.s32 %s1607_s12, %s1655_s15  ;;  %p79_p0 = scmp.ne.s32.totalorder %s1603_s11, %s1599_s10 }
   0x6   : > { %p67_p1 = scmp.eq.s32.totalorder %s66_s17, 0  ;;  %p80_p2 = scmp.eq.s32.totalorder %s1651_s13, 1 }
   0x7   : > { %p85_p3 = scmp.ne.s32.totalorder %s1599_s10, %s1595_s9  ;;  %p86_p4 = scmp.eq.s32.totalorder %s1062_s14, 1 }
   0x8   : > { %s1666_s18 = scalar_select %p67_p1, %s1603_s11, %s69_s16  }
   0x9   : > { %p1668_p5 = por %p80_p2, %p79_p0  ;;  %p1672_p6 = por %p86_p4, %p85_p3 }
   0xa   : > { %p1065_p7 = scmp.ge.s32.totalorder %s1607_s12, 1  ;;  %p117_p8 = scmp.lt.s32.totalorder %s1607_s12, 3 }
   0xc   : > { %p118_p9 = pnand %p1065_p7, %p117_p8 }
   0xd   : > { %s1067_s21 = sshll.u32 (!%p118_p9), %s1651_s13, 3  ;;  %v1609_v0 = vmov (!%p118_p9), 0.0|0.0   ;;  %vm1610_vm0 = vmmov (!%p118_p9), 0   ;;  %v1611_v1 = vmov (!%p118_p9), 0.0   ;;  %vm213_vm1 = vcmask (!%p118_p9), 261120   ;;  %v1743_v31 = vld [vmem:[%s1950_s1] sm:$0xff] (!%p118_p9) }
   0xe   : > { %121 = sbr.rel (%p118_p9) target bundleno = 384 (0x180), region = 28  ;;  %1373 = vmatprep.subr.bf16.mxu0 (!%p118_p9), %v1609_v0  ;;  %1389 = vmatprep.subr.bf16.mxu1 (!%p118_p9), %v1609_v0  ;;  %p141_p10 = scmp.lt.s32.totalorder (!%p118_p9), %s1067_s21, 15  ;;  %vm1692_vm2 = vmpackc.low (!%p118_p9), %vm213_vm1, %vm213_vm1  ;;  %vm977_vm3 = vcmask (!%p118_p9), 519168  }
   0xf   : > { %1237 = vmatprep.mubr.msk.f32.mxu0 (!%p118_p9), %vm1610_vm0, %v1611_v1  ;;  %1256 = vmatprep.mubr.msk.f32.mxu1 (!%p118_p9), %vm1610_vm0, %v1611_v1  ;;  %s137_s28 = sand.u32 (!%p118_p9), 1, %s1599_s10   ;;  %s1148_s3 = sshll.u32 (!%p118_p9), %s1651_s13, 9 }
  0x10   : > { %s1066_s29 = sshll.u32 (!%p118_p9), %s137_s28, 5  ;;  %s1900_s7 = scalar_lea.hbm (!%p118_p9), %s1951_s2, %s1148_s3 }
  0x11   : > { %s139_s30 = scalar_lea.vmem (!%p118_p9), [#allocation2], %s1066_s29  ;;  %s1908_s8 = scalar_lea.sflag (!%p118_p9), [#allocation3], %s137_s28 }
  0x12   : > { %s1000_s4 = sshll.u32 (!%p118_p9), %s139_s30, 4  ;;  %s1612_s14 = smov (!%p118_p9), [#allocation2]   ;;  %s1902_s4 = int_to_ptr.vmem [resolvable:$true] %s1000_s4 }
  0x13   : > { %s1545_s13 = scalar_lea.vmem (!%p118_p9), %s1902_s4, 512  ;;  %s1549_s16 = sshll.u32 (!%p118_p9), %s1612_s14, 4  ;;  %s1550_s16 = int_to_ptr.vmem [resolvable:$false] %s1549_s16 }
  0x14   : > { %p1546_p11 = scmp.ne.s32.totalorder (!%p118_p9), %s1902_s4, %s1545_s13  ;;  %s1551_s17 = scalar_lea.vmem (!%p118_p9), %s1550_s16, 1024 }
  0x15   : > { %s1961_s21 = smov (!%p141_p10, %s1067_s21), 15  ;;  %p1552_p0 = scmp.lt.s32.totalorder %s1902_s4, %s1550_s16 }
  0x16   : > { %s1147_s22 = sshll.u32 %s1961_s21, 6  ;;  %p1547_p12 = pnand %p1546_p11, %p1668_p5 }
  0x17   : > { %s1688_s25 = scalar_lea.vmem %s1949_s0, %s1147_s22  ;;  %p1553_p1 = scmp.lt.s32.totalorder %s1551_s17, %s1545_s13 }
  0x18   : > { %v149_v3 = vld [vmem:[%s1688_s25] sm:$0xff]  ;;  %v150_v4 = vld [vmem:[%s1688_s25 + $0x8] sm:$0xff]  ;;  %v151_v9 = vld [vmem:[%s1688_s25 + $0x10] sm:$0xff]  ;;  %p1548_p13 = pneg %p1547_p12 }
  0x19   : > { %v157_v5 = vld [vmem:[%s1688_s25 + $0x40] sm:$0xff]  ;;  %v1374_v6 = vpack.c.bf16 %v150_v4, %v149_v3  ;;  %v158_v7 = vld [vmem:[%s1688_s25 + $0x48] sm:$0xff]  ;;  %v152_v10 = vld [vmem:[%s1688_s25 + $0x18] sm:$0xff]  ;;  %p1554_p2 = por %p1553_p1, %p1552_p0 }
  0x1a   : > { %v1390_v8 = vpack.c.bf16 %v158_v7, %v157_v5  ;;  %v159_v11 = vld [vmem:[%s1688_s25 + $0x50] sm:$0xff]  ;;  %v160_v12 = vld [vmem:[%s1688_s25 + $0x58] sm:$0xff]  ;;  %v1378_v13 = vpack.c.bf16 %v152_v10, %v151_v9  ;;  %v153_v15 = vld [vmem:[%s1688_s25 + $0x20] sm:$0xff] }
  0x1b   : > { %1376 = vmatpush3.bf16.xpose.msk.msra.mxu0 %vm1692_vm2, %v1374_v6  ;;  %v1394_v14 = vpack.c.bf16 %v160_v12, %v159_v11  ;;  %v154_v16 = vld [vmem:[%s1688_s25 + $0x28] sm:$0xff]  ;;  %v161_v17 = vld [vmem:[%s1688_s25 + $0x60] sm:$0xff]  ;;  %v155_v21 = vld [vmem:[%s1688_s25 + $0x30] sm:$0xff]  ;;  %p1555_p3 = pnand %p1554_p2, %p1548_p13 }
  0x1c   : > { %1392 = vmatpush3.bf16.xpose.msk.msra.mxu1 %vm1692_vm2, %v1390_v8  ;;  %1377 = vmatprep.subr.bf16.mxu0 %v1609_v0  ;;  %v162_v18 = vld [vmem:[%s1688_s25 + $0x68] sm:$0xff]  ;;  %v1382_v19 = vpack.c.bf16 %v154_v16, %v153_v15  ;;  %v156_v22 = vld [vmem:[%s1688_s25 + $0x38] sm:$0xff]  ;;  %v163_v23 = vld [vmem:[%s1688_s25 + $0x70] sm:$0xff] }
  0x1d   : > { %1393 = vmatprep.subr.bf16.mxu1 %v1609_v0  ;;  %v1398_v20 = vpack.c.bf16 %v162_v18, %v161_v17  ;;  %v164_v24 = vld [vmem:[%s1688_s25 + $0x78] sm:$0xff]  ;;  %v1386_v25 = vpack.c.bf16 %v156_v22, %v155_v21  ;;  %v165_v27 = vld [vmem:[%s1688_s25 + $0x80] sm:$0xff]  ;;  %v166_v28 = vld [vmem:[%s1688_s25 + $0x88] sm:$0xff] }
  0x1e   : > { %v1402_v26 = vpack.c.bf16 %v164_v24, %v163_v23  ;;  %v173_v29 = vld [vmem:[%s1688_s25 + $0xc0] sm:$0xff]  ;;  %v174_v30 = vld [vmem:[%s1688_s25 + $0xc8] sm:$0xff]  ;;  %v1406_v32 = vpack.c.bf16 %v166_v28, %v165_v27  ;;  %v167_v34 = vld [vmem:[%s1688_s25 + $0x90] sm:$0xff] }
  0x1f   : > { %v1422_v33 = vpack.c.bf16 %v174_v30, %v173_v29  ;;  %v168_v35 = vld [vmem:[%s1688_s25 + $0x98] sm:$0xff]  ;;  %v175_v36 = vld [vmem:[%s1688_s25 + $0xd0] sm:$0xff]  ;;  %v169_v40 = vld [vmem:[%s1688_s25 + $0xa0] sm:$0xff] }
  0x20   : > { %v176_v37 = vld [vmem:[%s1688_s25 + $0xd8] sm:$0xff]  ;;  %v1410_v38 = vpack.c.bf16 %v168_v35, %v167_v34  ;;  %v170_v41 = vld [vmem:[%s1688_s25 + $0xa8] sm:$0xff]  ;;  %v177_v42 = vld [vmem:[%s1688_s25 + $0xe0] sm:$0xff] }
  0x21   : > { %v1426_v39 = vpack.c.bf16 %v176_v37, %v175_v36  ;;  %v178_v43 = vld [vmem:[%s1688_s25 + $0xe8] sm:$0xff]  ;;  %v1414_v44 = vpack.c.bf16 %v170_v41, %v169_v40  ;;  %v171_v46 = vld [vmem:[%s1688_s25 + $0xb0] sm:$0xff]  ;;  %v172_v47 = vld [vmem:[%s1688_s25 + $0xb8] sm:$0xff] }
  0x22   : > { %v1430_v45 = vpack.c.bf16 %v178_v43, %v177_v42  ;;  %v179_v48 = vld [vmem:[%s1688_s25 + $0xf0] sm:$0xff]  ;;  %v180_v49 = vld [vmem:[%s1688_s25 + $0xf8] sm:$0xff]  ;;  %v1418_v50 = vpack.c.bf16 %v172_v47, %v171_v46  ;;  %v181_v52 = vld [vmem:[%s1688_s25 + $0x100] sm:$0xff] }
  0x23   : > { %1380 = vmatpush3.bf16.xpose.msk.msra.mxu0 %vm1692_vm2, %v1378_v13  ;;  %v1434_v51 = vpack.c.bf16 %v180_v49, %v179_v48  ;;  %v182_v53 = vld [vmem:[%s1688_s25 + $0x108] sm:$0xff]  ;;  %v189_v54 = vld [vmem:[%s1688_s25 + $0x140] sm:$0xff]  ;;  %v183_v58 = vld [vmem:[%s1688_s25 + $0x110] sm:$0xff] }
  0x24   : > { %1396 = vmatpush3.bf16.xpose.msk.msra.mxu1 %vm1692_vm2, %v1394_v14  ;;  %1381 = vmatprep.subr.bf16.mxu0 %v1609_v0  ;;  %v190_v55 = vld [vmem:[%s1688_s25 + $0x148] sm:$0xff]  ;;  %v1438_v56 = vpack.c.bf16 %v182_v53, %v181_v52  ;;  %v184_v59 = vld [vmem:[%s1688_s25 + $0x118] sm:$0xff]  ;;  %v191_v60 = vld [vmem:[%s1688_s25 + $0x150] sm:$0xff] }
  0x25   : > { %1397 = vmatprep.subr.bf16.mxu1 %v1609_v0  ;;  %v1454_v57 = vpack.c.bf16 %v190_v55, %v189_v54  ;;  %v192_v61 = vld [vmem:[%s1688_s25 + $0x158] sm:$0xff]  ;;  %v1442_v62 = vpack.c.bf16 %v184_v59, %v183_v58  ;;  %v185_v3 = vld [vmem:[%s1688_s25 + $0x120] sm:$0xff]  ;;  %v186_v4 = vld [vmem:[%s1688_s25 + $0x128] sm:$0xff] }
  0x26   : > { %v1458_v63 = vpack.c.bf16 %v192_v61, %v191_v60  ;;  %v193_v5 = vld [vmem:[%s1688_s25 + $0x160] sm:$0xff]  ;;  %v194_v6 = vld [vmem:[%s1688_s25 + $0x168] sm:$0xff]  ;;  %v1446_v7 = vpack.c.bf16 %v186_v4, %v185_v3  ;;  %v187_v9 = vld [vmem:[%s1688_s25 + $0x130] sm:$0xff] }
  0x27   : > { %v1462_v8 = vpack.c.bf16 %v194_v6, %v193_v5  ;;  %v188_v10 = vld [vmem:[%s1688_s25 + $0x138] sm:$0xff]  ;;  %v195_v11 = vld [vmem:[%s1688_s25 + $0x170] sm:$0xff]  ;;  %v197_v15 = vld [vmem:[%s1688_s25 + $0x180] sm:$0xff] }
  0x28   : > { %v196_v12 = vld [vmem:[%s1688_s25 + $0x178] sm:$0xff]  ;;  %v1450_v13 = vpack.c.bf16 %v188_v10, %v187_v9  ;;  %v198_v16 = vld [vmem:[%s1688_s25 + $0x188] sm:$0xff]  ;;  %v205_v17 = vld [vmem:[%s1688_s25 + $0x1c0] sm:$0xff] }
  0x29   : > { %v1466_v14 = vpack.c.bf16 %v196_v12, %v195_v11  ;;  %v206_v18 = vld [vmem:[%s1688_s25 + $0x1c8] sm:$0xff]  ;;  %v199_v21 = vld [vmem:[%s1688_s25 + $0x190] sm:$0xff]  ;;  %v200_v22 = vld [vmem:[%s1688_s25 + $0x198] sm:$0xff] }
  0x2a   : > { %v207_v23 = vld [vmem:[%s1688_s25 + $0x1d0] sm:$0xff]  ;;  %v208_v24 = vld [vmem:[%s1688_s25 + $0x1d8] sm:$0xff]  ;;  %v201_v27 = vld [vmem:[%s1688_s25 + $0x1a0] sm:$0xff] }
  0x2b   : > { %1384 = vmatpush3.bf16.xpose.msk.msra.mxu0 %vm1692_vm2, %v1382_v19  ;;  %v1470_v19 = vpack.c.bf16 %v198_v16, %v197_v15  ;;  %v202_v28 = vld [vmem:[%s1688_s25 + $0x1a8] sm:$0xff]  ;;  %v209_v29 = vld [vmem:[%s1688_s25 + $0x1e0] sm:$0xff]  ;;  %v204_v34 = vld [vmem:[%s1688_s25 + $0x1b8] sm:$0xff] }
  0x2c   : > { %1400 = vmatpush3.bf16.xpose.msk.msra.mxu1 %vm1692_vm2, %v1398_v20  ;;  %1385 = vmatprep.subr.bf16.mxu0 %v1609_v0  ;;  %v1486_v20 = vpack.c.bf16 %v206_v18, %v205_v17  ;;  %v1478_v30 = vpack.c.bf16 %v202_v28, %v201_v27  ;;  %v211_v35 = vld [vmem:[%s1688_s25 + $0x1f0] sm:$0xff]  ;;  %v212_v36 = vld [vmem:[%s1688_s25 + $0x1f8] sm:$0xff] }
  0x2d   : > { %1401 = vmatprep.subr.bf16.mxu1 %v1609_v0 }
  0x33   : > { %1388 = vmatpush3.bf16.xpose.msk.msra.mxu0 %vm1692_vm2, %v1386_v25  ;;  %v1474_v25 = vpack.c.bf16 %v200_v22, %v199_v21 }
  0x34   : > { %1404 = vmatpush3.bf16.xpose.msk.msra.mxu1 %vm1692_vm2, %v1402_v26  ;;  %1405 = vmatprep.subr.bf16.mxu0 %v1609_v0  ;;  %v1490_v26 = vpack.c.bf16 %v208_v24, %v207_v23 }
  0x35   : > { %1421 = vmatprep.subr.bf16.mxu1 %v1609_v0 }
  0x3a   : > { %1238 = vmatmul.mubr.msk.f32.vlgmr.msra.gmra.mrb[0].mxu0 %vm213_vm1, %v1743_v31 }
  0x3b   : > { %1257 = vmatmul.mubr.msk.f32.vlgmr.msra.gmra.mrb[0].mxu1 %vm213_vm1, %v1743_v31  ;;  %1408 = vmatpush3.bf16.xpose.msk.msra.mxu0 %vm1692_vm2, %v1406_v32 }
  0x3c   : > { %1424 = vmatpush3.bf16.xpose.msk.msra.mxu1 %vm1692_vm2, %v1422_v33  ;;  %1409 = vmatprep.subr.bf16.mxu0 %v1609_v0  ;;  %v203_v33 = vld [vmem:[%s1688_s25 + $0x1b0] sm:$0xff] }
  0x3d   : > { %1425 = vmatprep.subr.bf16.mxu1 %v1609_v0  ;;  %1275 = vmatprep.mubr.msk.f32.mxu0 %vm1610_vm0, %v1611_v1  ;;  %v1482_v37 = vpack.c.bf16 %v204_v34, %v203_v33 }
  0x3e   : > { %1294 = vmatprep.mubr.msk.f32.mxu1 %vm1610_vm0, %v1611_v1 }
  0x43   : > { %1412 = vmatpush3.bf16.xpose.msk.msra.mxu0 %vm1692_vm2, %v1410_v38  ;;  %v1498_v38 = vpack.c.bf16 %v212_v36, %v211_v35 }
  0x44   : > { %1428 = vmatpush3.bf16.xpose.msk.msra.mxu1 %vm1692_vm2, %v1426_v39  ;;  %1413 = vmatprep.subr.bf16.mxu0 %v1609_v0 }
  0x45   : > { %1429 = vmatprep.subr.bf16.mxu1 %v1609_v0 }
  0x4b   : > { %1416 = vmatpush3.bf16.xpose.msk.msra.mxu0 %vm1692_vm2, %v1414_v44 }
  0x4c   : > { %1432 = vmatpush3.bf16.xpose.msk.msra.mxu1 %vm1692_vm2, %v1430_v45  ;;  %1417 = vmatprep.subr.bf16.mxu0 %v1609_v0 }
  0x4d   : > { %1433 = vmatprep.subr.bf16.mxu1 %v1609_v0 }
  0x53   : > { %1420 = vmatpush3.bf16.xpose.msk.msra.mxu0 %vm1692_vm2, %v1418_v50 }
  0x54   : > { %1436 = vmatpush3.bf16.xpose.msk.msra.mxu1 %vm1692_vm2, %v1434_v51  ;;  %1437 = vmatprep.subr.bf16.mxu0 %v1609_v0 }
  0x55   : > { %1453 = vmatprep.subr.bf16.mxu1 %v1609_v0 }
  0x5a   : > { %1276 = vmatmul.mubr.msk.f32.vlgmr.msra.gmra.mrb[2].mxu0 %vm213_vm1, %v1743_v31 }
  0x5b   : > { %1295 = vmatmul.mubr.msk.f32.vlgmr.msra.gmra.mrb[2].mxu1 %vm213_vm1, %v1743_v31  ;;  %1440 = vmatpush3.bf16.xpose.msk.msra.mxu0 %vm1692_vm2, %v1438_v56 }
  0x5c   : > { %1456 = vmatpush3.bf16.xpose.msk.msra.mxu1 %vm1692_vm2, %v1454_v57  ;;  %1441 = vmatprep.subr.bf16.mxu0 %v1609_v0 }
  0x5d   : > { %1457 = vmatprep.subr.bf16.mxu1 %v1609_v0  ;;  %1313 = vmatprep.mubr.msk.f32.mxu0 %vm1610_vm0, %v1611_v1 }
  0x5e   : > { %1332 = vmatprep.mubr.msk.f32.mxu1 %vm1610_vm0, %v1611_v1 }
  0x63   : > { %1444 = vmatpush3.bf16.xpose.msk.msra.mxu0 %vm1692_vm2, %v1442_v62 }
  0x64   : > { %1460 = vmatpush3.bf16.xpose.msk.msra.mxu1 %vm1692_vm2, %v1458_v63  ;;  %1445 = vmatprep.subr.bf16.mxu0 %v1609_v0 }
  0x65   : > { %1461 = vmatprep.subr.bf16.mxu1 %v1609_v0 }
  0x6b   : > { %1448 = vmatpush3.bf16.xpose.msk.msra.mxu0 %vm1692_vm2, %v1446_v7 }
  0x6c   : > { %1464 = vmatpush3.bf16.xpose.msk.msra.mxu1 %vm1692_vm2, %v1462_v8  ;;  %1449 = vmatprep.subr.bf16.mxu0 %v1609_v0 }
  0x6d   : > { %1465 = vmatprep.subr.bf16.mxu1 %v1609_v0 }
  0x73   : > { %1452 = vmatpush3.bf16.xpose.msk.msra.mxu0 %vm1692_vm2, %v1450_v13 }
  0x74   : > { %1468 = vmatpush3.bf16.xpose.msk.msra.mxu1 %vm1692_vm2, %v1466_v14  ;;  %1469 = vmatprep.subr.bf16.mxu0 %v1609_v0 }
  0x75   : > { %1485 = vmatprep.subr.bf16.mxu1 %v1609_v0 }
  0x7a   : > { %1314 = vmatmul.mubr.msk.f32.vlgmr.msra.gmra.mrb[4].mxu0 %vm213_vm1, %v1743_v31 }
  0x7b   : > { %1333 = vmatmul.mubr.msk.f32.vlgmr.msra.gmra.mrb[4].mxu1 %vm213_vm1, %v1743_v31  ;;  %1472 = vmatpush3.bf16.xpose.msk.msra.mxu0 %vm1692_vm2, %v1470_v19 }
  0x7c   : > { %1488 = vmatpush3.bf16.xpose.msk.msra.mxu1 %vm1692_vm2, %v1486_v20  ;;  %1473 = vmatprep.subr.bf16.mxu0 %v1609_v0 }
  0x7d   : > { %1489 = vmatprep.subr.bf16.mxu1 %v1609_v0  ;;  %1351 = vmatprep.mubr.msk.f32.mxu0 %vm1610_vm0, %v1611_v1 }
  0x7e   : > { %1370 = vmatprep.mubr.msk.f32.mxu1 %vm1610_vm0, %v1611_v1  ;;  %v210_v1 = vld [vmem:[%s1688_s25 + $0x1e8] sm:$0xff] }
  0x7f   : > { %v1494_v32 = vpack.c.bf16 %v210_v1, %v209_v29 }
  0x83   : > { %1476 = vmatpush3.bf16.xpose.msk.msra.mxu0 %vm1692_vm2, %v1474_v25 }
  0x84   : > { %1492 = vmatpush3.bf16.xpose.msk.msra.mxu1 %vm1692_vm2, %v1490_v26  ;;  %1477 = vmatprep.subr.bf16.mxu0 %v1609_v0 }
  0x85   : > { %1493 = vmatprep.subr.bf16.mxu1 %v1609_v0 }
  0x8b   : > { %1480 = vmatpush3.bf16.xpose.msk.msra.mxu0 %vm1692_vm2, %v1478_v30 }
  0x8c   : > { %1496 = vmatpush3.bf16.xpose.msk.msra.mxu1 %vm1692_vm2, %v1494_v32  ;;  %1481 = vmatprep.subr.bf16.mxu0 %v1609_v0 }
  0x8d   : > { %1497 = vmatprep.subr.bf16.mxu1 %v1609_v0 }
  0x93   : > { %1484 = vmatpush3.bf16.xpose.msk.msra.mxu0 %vm1692_vm2, %v1482_v37 }
  0x94   : > { %1500 = vmatpush3.bf16.xpose.msk.msra.mxu1 %vm1692_vm2, %v1498_v38 }
  0x9a   : > { %1352 = vmatmul.mubr.msk.f32.vlgmr.msra.gmra.mrb[6].mxu0 %vm213_vm1, %v1743_v31 }
  0x9b   : > { %1371 = vmatmul.mubr.msk.f32.vlgmr.msra.gmra.mrb[6].mxu1 %vm213_vm1, %v1743_v31 }
 0x10d   : > { %v307_v0 = vpop.f32.mrb[0].mxu0 }
 0x10e   : > { %v969_v39 = vpack.c.bf16 %v307_v0, %v307_v0  ;;  %v401_v40 = vpop.f32.mrb[0].mxu1  ;;  %v1239_v41 = vpop.f32.mrb[1].mxu0 }
 0x10f   : > { %v970_v42 = vpack.c.bf16 %v401_v40, %v401_v40  ;;  %v1258_v43 = vpop.f32.mrb[1].mxu1 }
 0x110   : > { %978 = vst.msk [vmem:[%s139_s30] sm:$0xf] %vm977_vm3, %v969_v39 }
 0x111   : > { %979 = vst.msk [vmem:[%s139_s30 + $0x4] sm:$0xf] %vm977_vm3, %v970_v42 }
 0x12d   : > { %v495_v2 = vpop.f32.mrb[2].mxu0 }
 0x12e   : > { %v971_v44 = vpack.c.bf16 %v495_v2, %v495_v2  ;;  %v589_v45 = vpop.f32.mrb[2].mxu1  ;;  %v1277_v31 = vpop.f32.mrb[3].mxu0 }
 0x12f   : > { %v972_v46 = vpack.c.bf16 %v589_v45, %v589_v45  ;;  %v1296_v47 = vpop.f32.mrb[3].mxu1 }
 0x130   : > { %980 = vst.msk [vmem:[%s139_s30 + $0x8] sm:$0xf] %vm977_vm3, %v971_v44 }
 0x131   : > { %981 = vst.msk [vmem:[%s139_s30 + $0xc] sm:$0xf] %vm977_vm3, %v972_v46 }
 0x14d   : > { %v683_v48 = vpop.f32.mrb[4].mxu0 }
 0x14e   : > { %v973_v49 = vpack.c.bf16 %v683_v48, %v683_v48  ;;  %v777_v50 = vpop.f32.mrb[4].mxu1  ;;  %v1315_v51 = vpop.f32.mrb[5].mxu0 }
 0x14f   : > { %v974_v52 = vpack.c.bf16 %v777_v50, %v777_v50  ;;  %v1334_v53 = vpop.f32.mrb[5].mxu1 }
 0x150   : > { %982 = vst.msk [vmem:[%s139_s30 + $0x10] sm:$0xf] %vm977_vm3, %v973_v49 }
 0x151   : > { %983 = vst.msk [vmem:[%s139_s30 + $0x14] sm:$0xf] %vm977_vm3, %v974_v52 }
 0x16d   : > { %v871_v54 = vpop.f32.mrb[6].mxu0 }
 0x16e   : > { %v975_v55 = vpack.c.bf16 %v871_v54, %v871_v54  ;;  %v965_v56 = vpop.f32.mrb[6].mxu1  ;;  %v1353_v57 = vpop.f32.mrb[7].mxu0 }
 0x16f   : > { %v976_v58 = vpack.c.bf16 %v965_v56, %v965_v56  ;;  %v1372_v59 = vpop.f32.mrb[7].mxu1 }
 0x170   : > { %984 = vst.msk [vmem:[%s139_s30 + $0x18] sm:$0xf] %vm977_vm3, %v975_v55 }
 0x171   : > { %985 = vst.msk [vmem:[%s139_s30 + $0x1c] sm:$0xf] %vm977_vm3, %v976_v58 }
 0x172   : > { %1558 = shalt.err (!%p1555_p3)
}
 0x173   : > { %s1559_s21 = scalar_lea.hbm %s1900_s7, 512  ;;  %s1563_s24 = scalar_lea.hbm %s1951_s2, 1024 }
 0x174   : > { %p1560_p4 = scmp.ne.s32.totalorder %s1900_s7, %s1559_s21  ;;  %p1564_p9 = scmp.lt.u32.totalorder %s1900_s7, %s1951_s2 }
 0x175   : > { %p1565_p10 = scmp.lt.u32.totalorder %s1563_s24, %s1559_s21  ;;  %p1567_p12 = scmp.lt.u32.totalorder %s1559_s21, %s1900_s7 }
 0x176   : > { %p1561_p7 = pnand %p1560_p4, %p1668_p5 }
 0x177   : > { %p1566_p11 = por %p1565_p10, %p1564_p9 }
 0x178   : > { %p1562_p8 = pneg %p1561_p7 }
 0x179   : > { %p1568_p13 = por %p1567_p12, %p1566_p11 }
 0x17b   : > { %p1569_p0 = pnand %p1568_p13, %p1562_p8 }
 0x17d   : > { %1572 = shalt.err (!%p1569_p0)
}
 0x17e   : > { %s1613_s27 = smov 64   ;;  %s1614_s28 = smov 4  }
 0x17f   : > { %1501 = dma.vmem_to_hbm [thread:$0]  (%p1668_p5), %s1902_s4, 512, %s1900_s7, %s1908_s8, %s1613_s27, %s1613_s27, %s1614_s28  }
 0x180 PF: > { %p1507_p1 = scmp.ge.s32.totalorder %s1607_s12, 2  ;;  %s1015_s29 = sand.u32 1, %s1595_s9  }
 0x181   : > { %s1016_s30 = scalar_lea.sflag [#allocation3], %s1015_s29 }
 0x182   : > { %p1504_p2 = pnand %p1507_p1, %p1672_p6 }
 0x184   : > { %1590 = dma.done.wait (!%p1504_p2), %s1016_s30, 512  }
 0x185   : > { %1592 = vsyncadd (!%p1504_p2), %s1016_s30, 4294966784  ;;  %p12_p3 = scmp.ge.s32.totalorder %s1655_s15, 4   ;;  %s1956_s9 = smov %s1599_s10 }
 0x186   : > { %s1957_s10 = smov %s1603_s11  ;;  %s1958_s11 = smov %s1666_s18 }
 0x187   : > { %s1959_s12 = smov %s1655_s15  ;;  %14 = sbr.rel (!%p12_p3) target bundleno = 3 (0x3), region = 63 }
 0x18e   :  { %1021 = vsyncpa [#allocation3], 1 }
 0x18f   :  { %1023 = vsyncpa [#allocation3 + $0x1], 1 }

</bundles_post_ra>
